<compile_context>
chip_gen: v5e
topology: v5e:2x2
jax: 0.10.0
libtpu: 0.0.40
codegen_flags: <defaults>
</compile_context>

<pallas_src>
import jax
import jax.numpy as jnp
from jax.experimental import pallas as pl
from jax.experimental.pallas import tpu as pltpu


def _round_up(x, m):
    return ((x + m - 1) // m) * m


def _chip_profile():
    """Return (mxu_align, vmem_cap_bytes, num_tensorcores) for the local TPU."""
    kind = ""
    try:
        kind = jax.devices()[0].device_kind.lower()
    except Exception:
        pass
    phys_vmem = None
    try:
        phys_vmem = int(pltpu.get_tpu_info().vmem_capacity_bytes)
    except Exception:
        phys_vmem = None

    if ("v5e" in kind) or ("v5 lite" in kind) or ("v5lite" in kind):
        align, cap, cores = 128, 96 << 20, 1       # 128x128 MXU, 128 MiB VMEM
    elif "v6" in kind:
        align, cap, cores = 256, 96 << 20, 1       # 256x256 MXU, 128 MiB VMEM
    elif ("v7" in kind) or ("tpu7" in kind):
        align, cap, cores = 256, 48 << 20, 2       # 64 MiB/TC -> leave headroom
    else:
        align, cap, cores = 128, 48 << 20, 1       # unknown: conservative
    if phys_vmem:
        cap = min(cap, max(phys_vmem - (16 << 20), 16 << 20))
    return align, cap, cores


def _make_mlp_kernel(direct_acc):
    """Build the fused kernel. direct_acc=True accumulates straight into o_ref (f32 out)."""
    if direct_acc:
        def kernel(x_ref, w1_ref, b1_ref, w2_ref, b2_ref, o_ref):
            k = pl.program_id(2)
            # fc1 partial on the MXU, f32 accumulate; bias+ReLU in f32. Each k
            # step covers a disjoint hidden slice, so per-slice ReLU is exact.
            h = jnp.dot(x_ref[...], w1_ref[...], preferred_element_type=jnp.float32)
            h = jnp.maximum(h + b1_ref[...], 0.0)
            partial = jnp.dot(h.astype(w2_ref.dtype), w2_ref[...],
                              preferred_element_type=jnp.float32)

            @pl.when(k == 0)
            def _init():
                o_ref[...] = partial + b2_ref[...]

            @pl.when(k > 0)
            def _accumulate():
                o_ref[...] += partial
    else:
        def kernel(x_ref, w1_ref, b1_ref, w2_ref, b2_ref, o_ref, acc_ref):
            k = pl.program_id(2)
            h = jnp.dot(x_ref[...], w1_ref[...], preferred_element_type=jnp.float32)
            h = jnp.maximum(h + b1_ref[...], 0.0)
            partial = jnp.dot(h.astype(w2_ref.dtype), w2_ref[...],
                              preferred_element_type=jnp.float32)

            @pl.when(k == 0)
            def _init():
                acc_ref[...] = partial + b2_ref[...]

            @pl.when(k > 0)
            def _accumulate():
                acc_ref[...] += partial

            @pl.when(k == pl.num_programs(2) - 1)
            def _finalize():
                o_ref[...] = acc_ref[...].astype(o_ref.dtype)
    return kernel


def prepare_mlp_params(w1, b1, w2, b2, *, compute_dtype=jnp.bfloat16,
                       th_pref=512, tn_pref=1024, max_resident_weight_bytes=None):
    """One-time cast/pad of the weights + tile plan (hoisted out of the forward)."""
    align, vmem_cap, cores = _chip_profile()
    cdt = jnp.dtype(compute_dtype)
    itm = cdt.itemsize
    f32 = jnp.float32

    D_in, H = w1.shape
    H2, D_out = w2.shape
    assert H2 == H, "w1/w2 hidden dims disagree"

    D_in_p = _round_up(D_in, align)     # TODO(synk): tile D_in too for very large input_dim

    # D_out tile (grid axis 1, "parallel"): bounded so W2/out/acc blocks stay small.
    TN = min(_round_up(tn_pref, align), _round_up(D_out, align))
    D_out_p = _round_up(D_out, TN)

    # Hidden tile: keep the full hidden dim resident when the (double-buffered)
    # weight blocks fit the per-generation VMEM budget -> weights DMA'd once.
    H_a = _round_up(H, align)
    if max_resident_weight_bytes is None:
        max_resident_weight_bytes = int(0.55 * vmem_cap)
    resident_bytes = 2 * itm * (D_in_p * H_a + H_a * TN)   # x2: default double-buffering
    if resident_bytes <= max_resident_weight_bytes:
        TH = H_a
    else:
        TH = min(_round_up(th_pref, align), H_a)
    H_p = _round_up(H, TH)

    # Zero padding keeps the math exact: padded input columns, hidden units and
    # output columns contribute exactly zero.
    w1p = jnp.pad(w1.astype(cdt), ((0, D_in_p - D_in), (0, H_p - H)))
    b1p = jnp.pad(jnp.reshape(b1, (1, -1)).astype(f32), ((0, 0), (0, H_p - H)))
    w2p = jnp.pad(w2.astype(cdt), ((0, H_p - H), (0, D_out_p - D_out)))
    b2p = jnp.pad(jnp.reshape(b2, (1, -1)).astype(f32), ((0, 0), (0, D_out_p - D_out)))

    plan = dict(D_in=D_in, H=H, D_out=D_out,
                D_in_p=D_in_p, H_p=H_p, D_out_p=D_out_p,
                TH=TH, TN=TN, compute_dtype=cdt,
                align=align, vmem_cap=vmem_cap, cores=cores)
    return {"arrays": (w1p, b1p, w2p, b2p), "plan": plan}


def mlp_forward(x, prepared, *, tm_pref=512):
    """x: (B, D_in) -> (B, D_out) = relu(x @ W1 + b1) @ W2 + b2."""
    w1p, b1p, w2p, b2p = prepared["arrays"]
    plan = prepared["plan"]
    D_in, H, D_out = plan["D_in"], plan["H"], plan["D_out"]
    D_in_p, H_p, D_out_p = plan["D_in_p"], plan["H_p"], plan["D_out_p"]
    TH, TN = plan["TH"], plan["TN"]
    cdt = plan["compute_dtype"]
    vmem_cap, cores = plan["vmem_cap"], plan["cores"]

    B = x.shape[0]
    assert x.shape[1] == D_in
    out_dtype = x.dtype
    itm = cdt.itemsize
    otm = jnp.dtype(out_dtype).itemsize
    direct_acc = jnp.dtype(out_dtype) == jnp.float32

    def vmem_est(tm):
        est = 2 * (tm * D_in_p * itm          # x tile (double-buffered)
                   + D_in_p * TH * itm        # W1 block
                   + TH * 4                   # b1 block (f32)
                   + TH * TN * itm            # W2 block
                   + TN * 4                   # b2 block
                   + tm * TN * otm)           # out tile
        if not direct_acc:
            est += tm * TN * 4                # f32 accumulator scratch
        return est

    # Batch tile: large enough to be MXU-bound, split across TensorCores on
    # 2-TC chips, shrunk if the VMEM budget would be exceeded.
    TM = min(tm_pref, _round_up(B, 8))
    if cores >= 2:
        TM = min(TM, max(8, _round_up(-(-B // cores), 8)))
    while vmem_est(TM) > vmem_cap and TM > 8:
        TM = max(8, _round_up(TM // 2, 8))
    B_p = _round_up(B, TM)

    num_i, num_n, num_k = B_p // TM, D_out_p // TN, H_p // TH
    grid = (num_i, num_n, num_k)

    xp = jnp.pad(x.astype(cdt), ((0, B_p - B), (0, D_in_p - D_in)))

    vmem_limit = int(min(vmem_cap, max(int(vmem_est(TM) * 1.25) + (2 << 20), 32 << 20)))

    # Realistic HBM traffic: weights are fetched once when their block index is
    # constant, otherwise re-streamed per batch/output tile.
    w1_fetch = 1 if num_k == 1 else num_i * num_n
    w2_fetch = 1 if (num_k == 1 and num_n == 1) else num_i
    cost = pl.CostEstimate(
        flops=2 * B * D_in * H + 2 * B * H * D_out,
        transcendentals=0,
        bytes_accessed=int(B_p * D_in_p * itm
                           + B_p * D_out_p * otm
                           + w1_fetch * D_in_p * H_p * itm
                           + w2_fetch * H_p * D_out_p * itm
                           + H_p * 4 + D_out_p * 4),
    )

    kernel = _make_mlp_kernel(direct_acc)
    scratch = [] if direct_acc else [pltpu.VMEM((TM, TN), jnp.float32)]

    out_p = pl.pallas_call(
        kernel,
        out_shape=jax.ShapeDtypeStruct((B_p, D_out_p), out_dtype),
        grid_spec=pltpu.PrefetchScalarGridSpec(
            num_scalar_prefetch=0,
            grid=grid,
            in_specs=[
                pl.BlockSpec((TM, D_in_p), lambda i, n, k: (i, 0)),    # x tile
                pl.BlockSpec((D_in_p, TH), lambda i, n, k: (0, k)),    # W1 column block
                pl.BlockSpec((1, TH), lambda i, n, k: (0, k)),         # b1 slice
                pl.BlockSpec((TH, TN), lambda i, n, k: (k, n)),        # W2 block
                pl.BlockSpec((1, TN), lambda i, n, k: (0, n)),         # b2 slice
            ],
            out_specs=pl.BlockSpec((TM, TN), lambda i, n, k: (i, n)),
            scratch_shapes=scratch,
        ),
        compiler_params=pltpu.CompilerParams(
            dimension_semantics=("parallel", "parallel", "arbitrary"),
            vmem_limit_bytes=vmem_limit,
        ),
        cost_estimate=cost,
    )(xp, w1p, b1p, w2p, b2p)

    return out_p[:B, :D_out]


def init_mlp_params(key, input_dim, hidden_dim, output_dim, dtype=jnp.float32):
    """Init mimicking torch.nn.Linear (uniform(-1/sqrt(fan_in), 1/sqrt(fan_in)))."""
    k1, k2, k3, k4 = jax.random.split(key, 4)
    bound1 = 1.0 / (input_dim ** 0.5)
    bound2 = 1.0 / (hidden_dim ** 0.5)
    # Stored as (in_features, out_features) — transpose of PyTorch's (out, in).
    w1 = jax.random.uniform(k1, (input_dim, hidden_dim), dtype, -bound1, bound1)
    b1 = jax.random.uniform(k2, (1, hidden_dim), dtype, -bound1, bound1)
    w2 = jax.random.uniform(k3, (hidden_dim, output_dim), dtype, -bound2, bound2)
    b2 = jax.random.uniform(k4, (1, output_dim), dtype, -bound2, bound2)
    return w1, b1, w2, b2


def mlp_reference(x, w1, b1, w2, b2, compute_dtype=jnp.float32):
    cd = jnp.dtype(compute_dtype)
    h = jnp.dot(x.astype(cd), w1.astype(cd), preferred_element_type=jnp.float32)
    h = jnp.maximum(h + b1.astype(jnp.float32), 0.0)
    out = jnp.dot(h.astype(cd), w2.astype(cd), preferred_element_type=jnp.float32)
    return out + b2.astype(jnp.float32)


if __name__ == "__main__":
    # Case 1: small shapes consistent with the module (single grid step,
    # resident-weight path).
    batch, input_dim, hidden_dim, output_dim = 8, 16, 32, 8
    key = jax.random.PRNGKey(0)
    kx, kp = jax.random.split(key)
    x = jax.random.normal(kx, (batch, input_dim), jnp.float32)
    w1, b1, w2, b2 = init_mlp_params(kp, input_dim, hidden_dim, output_dim)
    prep = prepare_mlp_params(w1, b1, w2, b2)

    out = jax.block_until_ready(mlp_forward(x, prep))
    assert out.shape == (batch, output_dim)
    ref_mixed = mlp_reference(x, w1, b1, w2, b2, compute_dtype=jnp.bfloat16)
    ref_f32 = mlp_reference(x, w1, b1, w2, b2, compute_dtype=jnp.float32)
    assert jnp.allclose(out, ref_mixed, atol=2e-2, rtol=2e-2)
    assert jnp.allclose(out, ref_f32, atol=5e-2, rtol=5e-2)

    # Case 2: non-aligned shapes exercising padding, the batch-tile split, and
    # the resident-weight (single reduction step) path.
    nb, ni, nh, no = 300, 200, 640, 136
    kx2, kp2 = jax.random.split(jax.random.PRNGKey(1))
    x2 = jax.random.normal(kx2, (nb, ni), jnp.float32)
    w1b, b1b, w2b, b2b = init_mlp_params(kp2, ni, nh, no)
    prep2 = prepare_mlp_params(w1b, b1b, w2b, b2b)
    out2 = jax.block_until_ready(mlp_forward(x2, prep2))
    ref2 = mlp_reference(x2, w1b, b1b, w2b, b2b, compute_dtype=jnp.bfloat16)
    assert out2.shape == (nb, no)
    assert jnp.allclose(out2, ref2, atol=3e-2, rtol=3e-2)

    # Case 3: same data, but force the streamed path: multiple hidden (k),
    # output (n) and batch (i) grid steps with the f32 direct-accumulate kernel.
    prep3 = prepare_mlp_params(w1b, b1b, w2b, b2b, th_pref=256, tn_pref=128,
                               max_resident_weight_bytes=0)
    out3 = jax.block_until_ready(mlp_forward(x2, prep3, tm_pref=128))
    assert out3.shape == (nb, no)
    assert jnp.allclose(out3, ref2, atol=3e-2, rtol=3e-2)

    # Case 4: bf16 input/output -> exercises the f32-scratch accumulate path
    # (multiple reduction steps, final downcast).
    x2_bf16 = x2.astype(jnp.bfloat16)
    out4 = jax.block_until_ready(mlp_forward(x2_bf16, prep3, tm_pref=128))
    ref4 = mlp_reference(x2_bf16.astype(jnp.float32), w1b, b1b, w2b, b2b,
                         compute_dtype=jnp.bfloat16)
    assert out4.shape == (nb, no)
    assert jnp.allclose(out4.astype(jnp.float32), ref4, atol=5e-2, rtol=5e-2)

    print("KERNEL_OK")
</pallas_src>

<mosaic_0001>
module attributes {stable_mosaic.version = 11 : i64} {
  func.func @kernel(%arg0: i32, %arg1: i32, %arg2: i32, %arg3: memref<8x128xbf16, #tpu.memory_space<vmem>>, %arg4: memref<128x128xbf16, #tpu.memory_space<vmem>>, %arg5: memref<1x128xf32, #tpu.memory_space<vmem>>, %arg6: memref<128x128xbf16, #tpu.memory_space<vmem>>, %arg7: memref<1x128xf32, #tpu.memory_space<vmem>>, %arg8: memref<8x128xf32, #tpu.memory_space<vmem>>) attributes {dimension_semantics = [#tpu.dimension_semantics<parallel>, #tpu.dimension_semantics<parallel>, #tpu.dimension_semantics<arbitrary>], iteration_bounds = array<i64: 1, 1, 1>, scalar_prefetch = 0 : i64, scratch_operands = 0 : i64, tpu.core_type = #tpu.core_type<tc>, window_params = [{transform_indices = @transform_0, window_bounds = array<i64: 8, 128>}, {transform_indices = @transform_1, window_bounds = array<i64: 128, 128>}, {transform_indices = @transform_2, window_bounds = array<i64: 1, 128>}, {transform_indices = @transform_3, window_bounds = array<i64: 128, 128>}, {transform_indices = @transform_4, window_bounds = array<i64: 1, 128>}, {transform_indices = @transform_5, window_bounds = array<i64: 8, 128>}]} {
    %c0 = arith.constant 0 : index
    %c0_0 = arith.constant 0 : index
    %0 = vector.load %arg3[%c0, %c0_0] : memref<8x128xbf16, #tpu.memory_space<vmem>>, vector<8x128xbf16>
    %c0_1 = arith.constant 0 : index
    %c0_2 = arith.constant 0 : index
    %1 = vector.load %arg4[%c0_1, %c0_2] : memref<128x128xbf16, #tpu.memory_space<vmem>>, vector<128x128xbf16>
    %cst = arith.constant dense<0.000000e+00> : vector<8x128xf32>
    %2 = tpu.matmul %0, %1, %cst {dimension_numbers = #tpu.dot_dimension_numbers<[1], [0], [0], [1], [0, 0, 1, 1], [], []>} : vector<8x128xbf16>, vector<128x128xbf16>, vector<8x128xf32> -> vector<8x128xf32>
    %c0_3 = arith.constant 0 : index
    %c0_4 = arith.constant 0 : index
    %3 = vector.load %arg5[%c0_3, %c0_4] : memref<1x128xf32, #tpu.memory_space<vmem>>, vector<1x128xf32>
    %4 = vector.broadcast %3 : vector<1x128xf32> to vector<8x128xf32>
    %5 = arith.addf %2, %4 : vector<8x128xf32>
    %cst_5 = arith.constant 0.000000e+00 : f32
    %6 = vector.broadcast %cst_5 : f32 to vector<8x128xf32>
    %7 = arith.maximumf %5, %6 : vector<8x128xf32>
    %8 = arith.truncf %7 : vector<8x128xf32> to vector<8x128xbf16>
    %c0_6 = arith.constant 0 : index
    %c0_7 = arith.constant 0 : index
    %9 = vector.load %arg6[%c0_6, %c0_7] : memref<128x128xbf16, #tpu.memory_space<vmem>>, vector<128x128xbf16>
    %cst_8 = arith.constant dense<0.000000e+00> : vector<8x128xf32>
    %10 = tpu.matmul %8, %9, %cst_8 {dimension_numbers = #tpu.dot_dimension_numbers<[1], [0], [0], [1], [0, 0, 1, 1], [], []>} : vector<8x128xbf16>, vector<128x128xbf16>, vector<8x128xf32> -> vector<8x128xf32>
    %c0_i32 = arith.constant 0 : i32
    %11 = arith.cmpi eq, %arg2, %c0_i32 : i32
    %12 = arith.extui %11 : i1 to i32
    %c0_i32_9 = arith.constant 0 : i32
    %13 = arith.cmpi ne, %12, %c0_i32_9 : i32
    scf.if %13 {
      %c0_12 = arith.constant 0 : index
      %c0_13 = arith.constant 0 : index
      %17 = vector.load %arg7[%c0_12, %c0_13] : memref<1x128xf32, #tpu.memory_space<vmem>>, vector<1x128xf32>
      %18 = vector.broadcast %17 : vector<1x128xf32> to vector<8x128xf32>
      %19 = arith.addf %10, %18 : vector<8x128xf32>
      %c0_14 = arith.constant 0 : index
      %c0_15 = arith.constant 0 : index
      %20 = vector.load %arg8[%c0_14, %c0_15] : memref<8x128xf32, #tpu.memory_space<vmem>>, vector<8x128xf32>
      tpu.vector_store %arg8[%c0_14, %c0_15], %19 {strides = array<i32>} : memref<8x128xf32, #tpu.memory_space<vmem>>, vector<8x128xf32>,
    } else {
    }
    %c0_i32_10 = arith.constant 0 : i32
    %14 = arith.cmpi sgt, %arg2, %c0_i32_10 : i32
    %15 = arith.extui %14 : i1 to i32
    %c0_i32_11 = arith.constant 0 : i32
    %16 = arith.cmpi ne, %15, %c0_i32_11 : i32
    scf.if %16 {
      %c0_12 = arith.constant 0 : index
      %c0_13 = arith.constant 0 : index
      %17 = vector.load %arg8[%c0_12, %c0_13] : memref<8x128xf32, #tpu.memory_space<vmem>>, vector<8x128xf32>
      %18 = arith.addf %17, %10 : vector<8x128xf32>
      %c0_14 = arith.constant 0 : index
      %c0_15 = arith.constant 0 : index
      %19 = vector.load %arg8[%c0_14, %c0_15] : memref<8x128xf32, #tpu.memory_space<vmem>>, vector<8x128xf32>
      tpu.vector_store %arg8[%c0_14, %c0_15], %18 {strides = array<i32>} : memref<8x128xf32, #tpu.memory_space<vmem>>, vector<8x128xf32>,
    } else {
    }
    return
  }
  func.func @transform_0(%arg0: i32, %arg1: i32, %arg2: i32) -> (i32, i32) {
    %c0_i32 = arith.constant 0 : i32
    %c0_i32_0 = arith.constant 0 : i32
    return %arg0, %c0_i32 : i32, i32
  }
  func.func @transform_1(%arg0: i32, %arg1: i32, %arg2: i32) -> (i32, i32) {
    %c0_i32 = arith.constant 0 : i32
    %c0_i32_0 = arith.constant 0 : i32
    return %c0_i32, %arg2 : i32, i32
  }
  func.func @transform_2(%arg0: i32, %arg1: i32, %arg2: i32) -> (i32, i32) {
    %c0_i32 = arith.constant 0 : i32
    %c0_i32_0 = arith.constant 0 : i32
    return %c0_i32, %arg2 : i32, i32
  }
  func.func @transform_3(%arg0: i32, %arg1: i32, %arg2: i32) -> (i32, i32) {
    %c0_i32 = arith.constant 0 : i32
    return %arg2, %arg1 : i32, i32
  }
  func.func @transform_4(%arg0: i32, %arg1: i32, %arg2: i32) -> (i32, i32) {
    %c0_i32 = arith.constant 0 : i32
    %c0_i32_0 = arith.constant 0 : i32
    return %c0_i32, %arg1 : i32, i32
  }
  func.func @transform_5(%arg0: i32, %arg1: i32, %arg2: i32) -> (i32, i32) {
    %c0_i32 = arith.constant 0 : i32
    return %arg0, %arg1 : i32, i32
  }
}

</mosaic_0001>

<bundles_post_ra>
// kernel: tpu_custom_call.1
= control target key start
LH: loop header
LB: loop body
LE: loop exit
PB: predicated region body
PF: predicated region fallthrough
CT: control target
= control target key end

     0   :  { %10 = vsyncpa [#allocation3], 0  ;;  %s506_s0 = inlined_call_operand.hbm [shape: bf16[8,128], index: 0, kind: input, shape index: {}]   ;;  %s507_s1 = inlined_call_operand.hbm [shape: bf16[128,128], index: 1, kind: input, shape index: {}]   ;;  %s508_s2 = inlined_call_operand.vmem [shape: f32[1,128], index: 2, kind: input, shape index: {}]   ;;  %s509_s3 = inlined_call_operand.hbm [shape: bf16[128,128], index: 3, kind: input, shape index: {}]   ;;  %s510_s4 = inlined_call_operand.vmem [shape: f32[1,128], index: 4, kind: input, shape index: {}]   ;;  %s511_s5 = inlined_call_operand.hbm [shape: f32[8,128], index: 5, kind: output, shape index: {}]  }
   0x1   :  { %11 = vsyncpa [#allocation6], 0  ;;  %s28_s20 = sshll.u32 %s507_s1, 4  ;;  %s29_s20 = int_to_ptr.hbm [resolvable:$true] %s28_s20 }
   0x2   :  { %12 = vsyncpa [#allocation4], 0  ;;  %s452_s21 = smov [#allocation5]   ;;  %s18_s25 = sshll.u32 %s506_s0, 4  ;;  %s19_s25 = int_to_ptr.hbm [resolvable:$true] %s18_s25 }
   0x3   :  { %s30_s22 = sshll.u32 %s452_s21, 4  ;;  %s453_s26 = smov 64   ;;  %s31_s22 = int_to_ptr.vmem [resolvable:$true] %s30_s22 }
   0x4   :  { %s454_s27 = smov 4   ;;  %s455_s28 = smov [#allocation2]  }
   0x5   :  { %36 = dma.hbm_to_vmem [thread:$0]  %s29_s20, 1024, %s31_s22, [#allocation6], %s453_s26, %s453_s26, %s454_s27  }
   0x6   :  { %s20_s29 = sshll.u32 %s455_s28, 4  ;;  %s43_s7 = sshll.u32 %s509_s3, 4  ;;  %s21_s29 = int_to_ptr.vmem [resolvable:$true] %s20_s29  ;;  %s44_s7 = int_to_ptr.hbm [resolvable:$true] %s43_s7 }
   0x7   :  { %23 = dma.hbm_to_vmem [thread:$0]  %s19_s25, 64, %s21_s29, [#allocation3]  }
   0x8   :  { %s456_s1 = smov [#allocation7]  }
   0x9   :  { %s45_s8 = sshll.u32 %s456_s1, 4  ;;  %s46_s8 = int_to_ptr.vmem [resolvable:$true] %s45_s8 }
   0xa   :  { %51 = dma.hbm_to_vmem [thread:$0]  %s44_s7, 1024, %s46_s8, [#allocation6], %s453_s26, %s453_s26, %s454_s27  }
   0xb   :  { %446 = dma.done.wait [#allocation3], 64  }
   0xc   :  { %447 = vsyncadd [#allocation3], 4294967232 }
   0xd   :  { %448 = dma.done.wait [#allocation6], 2048  }
   0xe   :  { %449 = vsyncadd [#allocation6], 4294965248  ;;  %v333_v0 = vld [vmem:[#allocation5 + $0x38] sm:$0xff]  ;;  %v332_v1 = vld [vmem:[#allocation5 + $0x30] sm:$0xff]  ;;  %s457_s11 = smov [#allocation8]   ;;  %s251_s15 = sshll.u32 %s511_s5, 4  ;;  %s252_s15 = int_to_ptr.hbm [resolvable:$true] %s251_s15 }
   0xf   :  { %135 = vmatpush.bf16.msra.mxu0 %v333_v0  ;;  %v341_v2 = vld [vmem:[#allocation7 + $0x38] sm:$0xff]  ;;  %v340_v3 = vld [vmem:[#allocation7 + $0x30] sm:$0xff]  ;;  %v331_v4 = vld [vmem:[#allocation5 + $0x28] sm:$0xff]  ;;  %s249_s12 = sshll.u32 %s457_s11, 4  ;;  %s250_s12 = int_to_ptr.vmem [resolvable:$true] %s249_s12 }
  0x10   :  { %214 = vmatpush.bf16.msra.mxu1 %v341_v2  ;;  %v339_v5 = vld [vmem:[#allocation7 + $0x28] sm:$0xff]  ;;  %v330_v6 = vld [vmem:[#allocation5 + $0x20] sm:$0xff]  ;;  %v329_v8 = vld [vmem:[#allocation5 + $0x18] sm:$0xff] }
  0x11   :  { %v338_v7 = vld [vmem:[#allocation7 + $0x20] sm:$0xff]  ;;  %v337_v9 = vld [vmem:[#allocation7 + $0x18] sm:$0xff]  ;;  %v328_v10 = vld [vmem:[#allocation5 + $0x10] sm:$0xff] }
  0x12   :  { %v336_v11 = vld [vmem:[#allocation7 + $0x10] sm:$0xff]  ;;  %v327_v12 = vld [vmem:[#allocation5 + $0x8] sm:$0xff]  ;;  %v326_v13 = vld [vmem:[#allocation5] sm:$0xff] }
  0x13   :  { %136 = vmatpush.bf16.msra.mxu0 %v332_v1  ;;  %v66_v14 = vld [vmem:[#allocation2] sm:$0xf]  ;;  %v335_v15 = vld [vmem:[#allocation7 + $0x8] sm:$0xff]  ;;  %v334_v16 = vld [vmem:[#allocation7] sm:$0xff] }
  0x14   :  { %215 = vmatpush.bf16.msra.mxu1 %v340_v3  ;;  %v348_v17 = vld [vmem:[%s508_s2] ss:$0 sm:$0xff] }
  0x15   :  { %v349_v23 = vld [vmem:[%s510_s4] ss:$0 sm:$0xff] }
  0x17   :  { %137 = vmatpush.bf16.msra.mxu0 %v331_v4 }
  0x18   :  { %216 = vmatpush.bf16.msra.mxu1 %v339_v5 }
  0x1b   :  { %138 = vmatpush.bf16.msra.mxu0 %v330_v6 }
  0x1c   :  { %217 = vmatpush.bf16.msra.mxu1 %v338_v7 }
  0x1f   :  { %139 = vmatpush.bf16.msra.mxu0 %v329_v8 }
  0x20   :  { %218 = vmatpush.bf16.msra.mxu1 %v337_v9 }
  0x23   :  { %140 = vmatpush.bf16.msra.mxu0 %v328_v10 }
  0x24   :  { %219 = vmatpush.bf16.msra.mxu1 %v336_v11 }
  0x27   :  { %141 = vmatpush.bf16.msra.mxu0 %v327_v12 }
  0x28   :  { %220 = vmatpush.bf16.msra.mxu1 %v335_v15 }
  0x2b   :  { %142 = vmatpush.bf16.msra.mxu0 %v326_v13 }
  0x2c   :  { %221 = vmatpush.bf16.msra.mxu1 %v334_v16 }
  0x2e   :  { %143 = vmatmul.bf16.vlgmr.msra.gmra.mxu0 %v66_v14 }
  0xab   :  { %v144_v18 = vpop.f32.mrf.mxu0 }
  0xac   :  { %v145_v19 = vadd.f32 %v348_v17, %v144_v18 }
  0xae   :  { %v148_v20 = vmax.f32 %v145_v19, 0.0 }
  0xb0   :  { %v149_v21 = vpack.c.bf16 %v148_v20, %v148_v20 }
  0xb2   :  { %222 = vmatmul.bf16.vlgmr.msra.gmra.mxu1 %v149_v21 }
  0xb3   :  { %v146_v22 = vpop.f32.mrf.mxu0 }
 0x12f   :  { %v223_v24 = vpop.f32.mrf.mxu1 }
 0x130   :  { %v235_v25 = vadd.f32 %v349_v23, %v223_v24 }
 0x132   :  { %236 = vst [vmem:[#allocation8] sm:$0xff] %v235_v25 }
 0x133   :  { %254 = dma.vmem_to_hbm [thread:$0]  %s250_s12, 128, %s252_s15, [#allocation4]  }
 0x137   :  { %v225_v26 = vpop.f32.mrf.mxu1 }
 0x138   :  { %450 = dma.done.wait [#allocation4], 128  }
 0x139   :  { %451 = vsyncadd [#allocation4], 4294967168 }
 0x13a   :  { %259 = vsyncpa [#allocation3], 1 }
 0x13b   :  { %260 = vsyncpa [#allocation6], 1 }
 0x13c   :  { %261 = vsyncpa [#allocation4], 1 }

</bundles_post_ra>
